<compile_context>
chip_gen: v7x
topology: tpu7x:2x2x1
jax: 0.10.0
libtpu: 0.0.40
codegen_flags: <defaults>
</compile_context>

<pallas_src>
import functools

import jax
import jax.numpy as jnp
from jax.experimental import pallas as pl
from jax.experimental.pallas import tpu as pltpu

LN_EPS = 1e-5


def _vmem_limit_bytes():
    # Generation-aware VMEM budget: ~75% of physical.
    try:
        cap = pltpu.get_tpu_info().vmem_capacity_bytes
    except Exception:
        cap = 64 * 1024 * 1024
    return int(min(cap * 3 // 4, 100 * 1024 * 1024))


VMEM_LIMIT = _vmem_limit_bytes()


# ---------------------------------------------------------------------------
# Kernel 1: matmul + bias (patch-embedding projection), M-tiled
# ---------------------------------------------------------------------------
def _matmul_bias_kernel(x_ref, w_ref, b_ref, o_ref):
    x = x_ref[...].astype(jnp.bfloat16)
    o_ref[...] = (
        jnp.dot(x, w_ref[...], preferred_element_type=jnp.float32) + b_ref[...]
    ).astype(o_ref.dtype)


def matmul_bias(x, w, b, *, tile_m=512):
    M, K = x.shape
    _, N = w.shape
    tm = min(tile_m, M)
    return pl.pallas_call(
        _matmul_bias_kernel,
        grid=(pl.cdiv(M, tm),),
        out_shape=jax.ShapeDtypeStruct((M, N), jnp.float32),
        in_specs=[
            pl.BlockSpec((tm, K), lambda i: (i, 0)),
            pl.BlockSpec((K, N), lambda i: (0, 0)),
            pl.BlockSpec((1, N), lambda i: (0, 0)),
        ],
        out_specs=pl.BlockSpec((tm, N), lambda i: (i, 0)),
        compiler_params=pltpu.CompilerParams(
            dimension_semantics=("parallel",),
            vmem_limit_bytes=VMEM_LIMIT),
    )(x, w, b.reshape(1, N))


# ---------------------------------------------------------------------------
# Kernel 2: fused pre-LN encoder layer (MHSA + residual + GELU MLP + residual)
# grid=(B,); all weights have constant index_maps -> resident across the grid.
# ---------------------------------------------------------------------------
def _encoder_layer_kernel(
    x_ref,
    ln1g_ref, ln1b_ref, wqkv_ref, bqkv_ref, wo_ref, bo_ref,
    ln2g_ref, ln2b_ref, w1_ref, b1_ref, w2_ref, b2_ref,
    y_ref, *attn_refs, num_heads,
):
    x0 = x_ref[0].astype(jnp.float32)              # (S, E)
    S, E = x0.shape
    H = num_heads
    hd = E // H
    scale = 1.0 / (hd ** 0.5)

    # ---- LayerNorm 1 (f32) ----
    mu = jnp.mean(x0, axis=-1, keepdims=True)
    var = jnp.mean((x0 - mu) ** 2, axis=-1, keepdims=True)
    xn = (x0 - mu) * jax.lax.rsqrt(var + LN_EPS) * ln1g_ref[...] + ln1b_ref[...]
    xn_b = xn.astype(jnp.bfloat16)

    # ---- fused QKV projection: one MXU pass, N = 3E ----
    qkv = (jnp.dot(xn_b, wqkv_ref[...], preferred_element_type=jnp.float32)
           + bqkv_ref[...])                         # (S, 3E) f32

    qh = ((qkv[:, :E] * scale)
          .reshape(S, H, hd).swapaxes(0, 1).astype(jnp.bfloat16))   # (H, S, hd)
    kh = qkv[:, E:2 * E].reshape(S, H, hd).swapaxes(0, 1).astype(jnp.bfloat16)
    vh = qkv[:, 2 * E:].reshape(S, H, hd).swapaxes(0, 1).astype(jnp.bfloat16)

    # ---- attention scores + softmax (f32 stats), lane dim of scores = S ----
    sc = jnp.einsum("hqd,hkd->hqk", qh, kh,
                    preferred_element_type=jnp.float32)             # (H, S, S)
    m = jnp.max(sc, axis=-1, keepdims=True)
    e = jnp.exp(sc - m)
    denom = jnp.sum(e, axis=-1, keepdims=True)

    if attn_refs:
        # This layer's attention map is returned to the caller: use exact
        # normalization so the emitted map rows sum to 1.
        p = e / denom
        attn_refs[0][0] = p.astype(attn_refs[0].dtype)
    else:
        p = e * pl.reciprocal(denom, approx=True)   # EUP, off critical path

    ctx = jnp.einsum("hqk,hkd->hqd", p.astype(jnp.bfloat16), vh,
                     preferred_element_type=jnp.float32)            # (H, S, hd)

    # ---- output projection: per-head batched matmul + head-sum ----
    # wo_ref is (H, hd, E); concat-over-heads folds into the contraction and
    # the stored result is lane-dense (E).
    proj = jnp.einsum("hqd,hde->hqe", ctx.astype(jnp.bfloat16), wo_ref[...],
                      preferred_element_type=jnp.float32)           # (H, S, E)
    attn_out = jnp.sum(proj, axis=0) + bo_ref[...]                  # (S, E)
    x1 = x0 + attn_out                                              # residual 1

    # ---- LayerNorm 2 (f32) ----
    mu2 = jnp.mean(x1, axis=-1, keepdims=True)
    var2 = jnp.mean((x1 - mu2) ** 2, axis=-1, keepdims=True)
    xn2 = ((x1 - mu2) * jax.lax.rsqrt(var2 + LN_EPS)
           * ln2g_ref[...] + ln2b_ref[...]).astype(jnp.bfloat16)

    # ---- MLP (bf16 MXU, f32 accumulate) ----
    h1 = jnp.dot(xn2, w1_ref[...], preferred_element_type=jnp.float32) + b1_ref[...]
    # TODO(synk): PyTorch nn.GELU default is exact erf; tanh approximation kept
    # here for Mosaic-lowering safety (small numerical difference).
    h1 = jax.nn.gelu(h1, approximate=True)
    mlp_out = (jnp.dot(h1.astype(jnp.bfloat16), w2_ref[...],
                       preferred_element_type=jnp.float32) + b2_ref[...])

    y_ref[0] = (x1 + mlp_out).astype(y_ref.dtype)                   # residual 2


def encoder_layer(x, p, num_heads, *, emit_attn):
    B, S, E = x.shape
    H = num_heads
    hd = E // H
    Hm = p["w1"].shape[1]
    wo3 = p["wo"].reshape(H, hd, E)     # fold head-concat into batched matmul

    const2d = lambda shp: pl.BlockSpec(shp, lambda b: (0, 0))
    const3d = lambda shp: pl.BlockSpec(shp, lambda b: (0, 0, 0))

    in_specs = [
        pl.BlockSpec((1, S, E), lambda b: (b, 0, 0)),   # x (residual input)
        const2d((1, E)), const2d((1, E)),               # ln1 gamma / beta
        const2d((E, 3 * E)), const2d((1, 3 * E)),       # fused Wqkv / bqkv
        const3d((H, hd, E)), const2d((1, E)),           # Wo (per-head) / bo
        const2d((1, E)), const2d((1, E)),               # ln2 gamma / beta
        const2d((E, Hm)), const2d((1, Hm)),             # W1 / b1
        const2d((Hm, E)), const2d((1, E)),              # W2 / b2
    ]

    y_shape = jax.ShapeDtypeStruct((B, S, E), jnp.float32)
    y_spec = pl.BlockSpec((1, S, E), lambda b: (b, 0, 0))
    if emit_attn:
        out_shape = (y_shape,
                     jax.ShapeDtypeStruct((B, H, S, S), jnp.float32))
        out_specs = (y_spec,
                     pl.BlockSpec((1, H, S, S), lambda b: (b, 0, 0, 0)))
    else:
        out_shape = y_shape
        out_specs = y_spec

    res = pl.pallas_call(
        functools.partial(_encoder_layer_kernel, num_heads=num_heads),
        grid=(B,),
        out_shape=out_shape,
        in_specs=in_specs,
        out_specs=out_specs,
        compiler_params=pltpu.CompilerParams(
            dimension_semantics=("parallel",),
            vmem_limit_bytes=VMEM_LIMIT),
    )(
        x,
        p["ln1_g"], p["ln1_b"], p["wqkv"], p["bqkv"], wo3, p["bo"],
        p["ln2_g"], p["ln2_b"], p["w1"], p["b1"], p["w2"], p["b2"],
    )
    if emit_attn:
        return res[0], res[1]
    return res, None


# ---------------------------------------------------------------------------
# Kernel 3: MLP head = LayerNorm(CLS) @ W + b  (lane-padded output)
# ---------------------------------------------------------------------------
def _mlp_head_kernel(x_ref, g_ref, b_ref, w_ref, bias_ref, o_ref):
    x = x_ref[...].astype(jnp.float32)
    mu = jnp.mean(x, axis=-1, keepdims=True)
    var = jnp.mean((x - mu) ** 2, axis=-1, keepdims=True)
    xn = (x - mu) * jax.lax.rsqrt(var + LN_EPS) * g_ref[...] + b_ref[...]
    o_ref[...] = (
        jnp.dot(xn.astype(jnp.bfloat16), w_ref[...],
                preferred_element_type=jnp.float32) + bias_ref[...]
    ).astype(o_ref.dtype)


def mlp_head(cls_tok, head_params, num_classes):
    B, E = cls_tok.shape
    Cp = head_params["w"].shape[1]
    out = pl.pallas_call(
        _mlp_head_kernel,
        out_shape=jax.ShapeDtypeStruct((B, Cp), jnp.float32),
        in_specs=[
            pl.BlockSpec((B, E), lambda: (0, 0)),
            pl.BlockSpec((1, E), lambda: (0, 0)),
            pl.BlockSpec((1, E), lambda: (0, 0)),
            pl.BlockSpec((E, Cp), lambda: (0, 0)),
            pl.BlockSpec((1, Cp), lambda: (0, 0)),
        ],
        out_specs=pl.BlockSpec((B, Cp), lambda: (0, 0)),
        compiler_params=pltpu.CompilerParams(vmem_limit_bytes=VMEM_LIMIT),
    )(cls_tok, head_params["ln_g"], head_params["ln_b"],
      head_params["w"], head_params["b"])
    return out[:, :num_classes]


# ---------------------------------------------------------------------------
# Parameter init + full forward
# ---------------------------------------------------------------------------
def init_params(key, *, in_ch, emb_dim, patch_size, input_size,
                num_layers, num_heads, mlp_hidden, num_classes):
    n_patches = (input_size // patch_size) ** 2
    seq = n_patches + 1
    keys = iter(jax.random.split(key, 8 + 6 * num_layers))

    def nrm(shape, dtype=jnp.bfloat16, std=0.02):
        return (std * jax.random.normal(next(keys), shape)).astype(dtype)

    c_pad = ((num_classes + 127) // 128) * 128   # lane-dense head output
    head_w = jnp.zeros((emb_dim, c_pad), jnp.float32)
    head_w = head_w.at[:, :num_classes].set(
        0.02 * jax.random.normal(next(keys), (emb_dim, num_classes)))

    params = {
        "patch_w": nrm((in_ch * patch_size * patch_size, emb_dim)),
        "patch_b": jnp.zeros((emb_dim,), jnp.float32),
        "cls": nrm((1, 1, emb_dim), dtype=jnp.float32),
        "pos": nrm((1, seq, emb_dim), dtype=jnp.float32),
        "head": {
            "ln_g": jnp.ones((1, emb_dim), jnp.float32),
            "ln_b": jnp.zeros((1, emb_dim), jnp.float32),
            "w": head_w.astype(jnp.bfloat16),
            "b": jnp.zeros((1, c_pad), jnp.float32),
        },
        "blocks": [],
    }
    for _ in range(num_layers):
        blk = {
            "ln1_g": jnp.ones((1, emb_dim), jnp.float32),
            "ln1_b": jnp.zeros((1, emb_dim), jnp.float32),
            "wqkv": nrm((emb_dim, 3 * emb_dim)),           # fused Q|K|V
            "bqkv": jnp.zeros((1, 3 * emb_dim), jnp.float32),
            "wo": nrm((emb_dim, emb_dim)),
            "bo": jnp.zeros((1, emb_dim), jnp.float32),
            "ln2_g": jnp.ones((1, emb_dim), jnp.float32),
            "ln2_b": jnp.zeros((1, emb_dim), jnp.float32),
            "w1": nrm((emb_dim, mlp_hidden)),
            "b1": jnp.zeros((1, mlp_hidden), jnp.float32),
            "w2": nrm((mlp_hidden, emb_dim)),
            "b2": jnp.zeros((1, emb_dim), jnp.float32),
        }
        params["blocks"].append(blk)
    return params


def vit_forward(x_nchw, params, *, patch_size, num_heads, num_classes):
    # ---- PatchEmbedding: Conv2d(C, E, k=ps, stride=ps) as patch-matmul ----
    B, C, H, W = x_nchw.shape
    ps = patch_size
    gh, gw = H // ps, W // ps
    patches = x_nchw.reshape(B, C, gh, ps, gw, ps)
    patches = patches.transpose(0, 2, 4, 1, 3, 5).reshape(B * gh * gw, C * ps * ps)
    patches = patches.astype(jnp.bfloat16)        # stream pixels in bf16
    emb = matmul_bias(patches, params["patch_w"], params["patch_b"])   # Pallas
    emb = emb.reshape(B, gh * gw, -1)

    # prepend CLS token, add positional embedding (layout glue)
    cls = jnp.broadcast_to(params["cls"], (B, 1, emb.shape[-1]))
    x = jnp.concatenate([cls, emb], axis=1) + params["pos"]            # (B, S, E)

    # ---- fused encoder layers ----
    attn = None
    n_blocks = len(params["blocks"])
    for li, blk in enumerate(params["blocks"]):
        emit = (li == n_blocks - 1)   # reference only returns the last attn map
        x, a = encoder_layer(x, blk, num_heads, emit_attn=emit)
        if emit:
            attn = a

    # ---- CLS token + MLP head ----
    # (PyTorch layout (B,E,S) -> x[:, :, 0]; in (B,S,E) layout that is x[:, 0, :])
    cls_tok = x[:, 0, :]
    out = mlp_head(cls_tok, params["head"], num_classes)               # Pallas
    return out, attn


if __name__ == "__main__":
    # small shapes consistent with the module's forward
    B, C = 2, 3
    INPUT_SIZE, PATCH = 16, 8
    EMB, LAYERS, HEADS = 32, 2, 4
    MLP_HIDDEN, NUM_CLASSES = 64, 10

    key = jax.random.PRNGKey(0)
    kx, kp = jax.random.split(key)
    x = jax.random.normal(kx, (B, C, INPUT_SIZE, INPUT_SIZE), dtype=jnp.float32)

    params = init_params(
        kp, in_ch=C, emb_dim=EMB, patch_size=PATCH, input_size=INPUT_SIZE,
        num_layers=LAYERS, num_heads=HEADS, mlp_hidden=MLP_HIDDEN,
        num_classes=NUM_CLASSES,
    )

    out, attn_map = vit_forward(
        x, params, patch_size=PATCH, num_heads=HEADS, num_classes=NUM_CLASSES)
    jax.block_until_ready((out, attn_map))

    seq = (INPUT_SIZE // PATCH) ** 2 + 1
    assert out.shape == (B, NUM_CLASSES), out.shape
    assert attn_map.shape == (B, HEADS, seq, seq), attn_map.shape
    print("KERNEL_OK")
</pallas_src>

<mosaic_0001>
module attributes {stable_mosaic.version = 11 : i64} {
  func.func @_matmul_bias_kernel(%arg0: i32, %arg1: memref<8x192xbf16, #tpu.memory_space<vmem>>, %arg2: memref<192x32xbf16, #tpu.memory_space<vmem>>, %arg3: memref<1x32xf32, #tpu.memory_space<vmem>>, %arg4: memref<8x32xf32, #tpu.memory_space<vmem>>) attributes {dimension_semantics = [#tpu.dimension_semantics<parallel>], iteration_bounds = array<i64: 1>, scalar_prefetch = 0 : i64, scratch_operands = 0 : i64, tpu.core_type = #tpu.core_type<tc>, window_params = [{transform_indices = @transform_0, window_bounds = array<i64: 8, 192>}, {pipeline_mode = #tpu.pipeline_mode<synchronous>, transform_indices = @transform_1, window_bounds = array<i64: 192, 32>}, {pipeline_mode = #tpu.pipeline_mode<synchronous>, transform_indices = @transform_2, window_bounds = array<i64: 1, 32>}, {transform_indices = @transform_3, window_bounds = array<i64: 8, 32>}]} {
    %c0 = arith.constant 0 : index
    %c0_0 = arith.constant 0 : index
    %0 = vector.load %arg1[%c0, %c0_0] : memref<8x192xbf16, #tpu.memory_space<vmem>>, vector<8x192xbf16>
    %c0_1 = arith.constant 0 : index
    %c0_2 = arith.constant 0 : index
    %1 = vector.load %arg2[%c0_1, %c0_2] : memref<192x32xbf16, #tpu.memory_space<vmem>>, vector<192x32xbf16>
    %cst = arith.constant dense<0.000000e+00> : vector<8x32xf32>
    %2 = tpu.matmul %0, %1, %cst {dimension_numbers = #tpu.dot_dimension_numbers<[1], [0], [0], [1], [0, 0, 1, 1], [], []>} : vector<8x192xbf16>, vector<192x32xbf16>, vector<8x32xf32> -> vector<8x32xf32>
    %c0_3 = arith.constant 0 : index
    %c0_4 = arith.constant 0 : index
    %3 = vector.load %arg3[%c0_3, %c0_4] : memref<1x32xf32, #tpu.memory_space<vmem>>, vector<1x32xf32>
    %4 = vector.broadcast %3 : vector<1x32xf32> to vector<8x32xf32>
    %5 = arith.addf %2, %4 : vector<8x32xf32>
    %c0_5 = arith.constant 0 : index
    %c0_6 = arith.constant 0 : index
    %6 = vector.load %arg4[%c0_5, %c0_6] : memref<8x32xf32, #tpu.memory_space<vmem>>, vector<8x32xf32>
    tpu.vector_store %arg4[%c0_5, %c0_6], %5 {strides = array<i32>} : memref<8x32xf32, #tpu.memory_space<vmem>>, vector<8x32xf32>,
    return
  }
  func.func @transform_0(%arg0: i32) -> (i32, i32) {
    %c0_i32 = arith.constant 0 : i32
    %c0_i32_0 = arith.constant 0 : i32
    return %arg0, %c0_i32 : i32, i32
  }
  func.func @transform_1(%arg0: i32) -> (i32, i32) {
    %c0_i32 = arith.constant 0 : i32
    %c0_i32_0 = arith.constant 0 : i32
    %c0_i32_1 = arith.constant 0 : i32
    return %c0_i32, %c0_i32_0 : i32, i32
  }
  func.func @transform_2(%arg0: i32) -> (i32, i32) {
    %c0_i32 = arith.constant 0 : i32
    %c0_i32_0 = arith.constant 0 : i32
    %c0_i32_1 = arith.constant 0 : i32
    return %c0_i32, %c0_i32_0 : i32, i32
  }
  func.func @transform_3(%arg0: i32) -> (i32, i32) {
    %c0_i32 = arith.constant 0 : i32
    %c0_i32_0 = arith.constant 0 : i32
    return %arg0, %c0_i32 : i32, i32
  }
}

</mosaic_0001>

<bundles_post_ra>
// kernel: tpu_custom_call.1
= control target key start
LH: loop header
LB: loop body
LE: loop exit
PB: predicated region body
PF: predicated region fallthrough
CT: control target
= control target key end

     0   :  { %v242_v1 = vmov 0   ;;  %vm126_vm0 = vcmask 523264   ;;  %s318_s0 = inlined_call_operand.vmem [shape: bf16[8,192], index: 0, kind: input, shape index: {}]   ;;  %s319_s1 = inlined_call_operand.vmem [shape: bf16[192,32], index: 1, kind: input, shape index: {}]   ;;  %s320_s2 = inlined_call_operand.vmem [shape: f32[1,32], index: 2, kind: input, shape index: {}]   ;;  %s321_s3 = inlined_call_operand.hbm [shape: f32[8,32], index: 3, kind: output, shape index: {}]  }
   0x1   :  { %v204_v0 = vld [vmem:[%s319_s1] sm:$0xff]   ;;  %130 = vmatprep.subr.bf16.mxu0 %v242_v1  ;;  %v205_v2 = vld [vmem:[%s319_s1 + $0x8] sm:$0xff]   ;;  %v206_v3 = vld [vmem:[%s319_s1 + $0x10] sm:$0xff]  }
   0x2   :  { %131 = vmatpush1.bf16.msra.mxu0 %v204_v0  ;;  %v207_v4 = vld [vmem:[%s319_s1 + $0x18] sm:$0xff]   ;;  %v16_v5 = vld [vmem:[%s318_s0] sm:$0xff] }
   0x3   :  { %132 = vmatprep.subr.bf16.mxu0 %v242_v1 }
   0x6   :  { %133 = vmatpush1.bf16.msra.mxu0 %v205_v2 }
   0x7   :  { %134 = vmatprep.subr.bf16.mxu0 %v242_v1 }
   0xa   :  { %135 = vmatpush1.bf16.msra.mxu0 %v206_v3 }
   0xb   :  { %136 = vmatprep.subr.bf16.mxu0 %v242_v1 }
   0xc   :  { %8 = vsyncpa [#allocation3], 0  ;;  %v188_v6 = vcombine.high %v16_v5, %v16_v5  ;;  %v208_v7 = vld [vmem:[%s319_s1 + $0x20] sm:$0xff]   ;;  %v209_v8 = vld [vmem:[%s319_s1 + $0x28] sm:$0xff]   ;;  %v187_v15 = vcombine.low %v16_v5, %v16_v5  ;;  %s243_s12 = smov [#allocation2]   ;;  %vm170_vm1 = vcmask 261120  }
   0xd   :  { %v210_v9 = vld [vmem:[%s319_s1 + $0x30] sm:$0xff]   ;;  %v211_v10 = vld [vmem:[%s319_s1 + $0x38] sm:$0xff]   ;;  %v212_v11 = vld [vmem:[%s319_s1 + $0x40] sm:$0xff]   ;;  %s178_s13 = sshll.u32 %s243_s12, 4  ;;  %s179_s13 = int_to_ptr.vmem [resolvable:$true] %s178_s13 }
   0xe   :  { %137 = vmatpush1.bf16.msra.mxu0 %v207_v4  ;;  %201 = vmatprep.mubr.msk.bf16.mxu0 %vm126_vm0, %v188_v6  ;;  %v213_v12 = vld [vmem:[%s319_s1 + $0x48] sm:$0xff]   ;;  %v214_v13 = vld [vmem:[%s319_s1 + $0x50] sm:$0xff]   ;;  %v215_v14 = vld [vmem:[%s319_s1 + $0x58] sm:$0xff]   ;;  %s218_s14 = scalar_lea.vmem %s179_s13, 128  ;;  %p223_p1 = scmp.lt.s32.totalorder %s179_s13, %s179_s13 }
   0xf   :  { %138 = vmatprep.subr.bf16.mxu0 %v242_v1  ;;  %v186_v16 = vld [vmem:[%s320_s2] ss:$0 sm:$0xff]  ;;  %p219_p0 = scmp.ne.s32.totalorder %s179_s13, %s218_s14  ;;  %p224_p2 = scmp.lt.s32.totalorder %s218_s14, %s218_s14 }
  0x11   :  { %p225_p3 = por %p224_p2, %p223_p1 }
  0x12   :  { %139 = vmatpush1.bf16.msra.mxu0 %v208_v7 }
  0x13   :  { %140 = vmatprep.subr.bf16.mxu0 %v242_v1  ;;  %p226_p4 = pnand %p225_p3, %p219_p0 }
  0x16   :  { %141 = vmatpush1.bf16.msra.mxu0 %v209_v8 }
  0x17   :  { %142 = vmatprep.subr.bf16.mxu0 %v242_v1 }
  0x1a   :  { %143 = vmatpush1.bf16.msra.mxu0 %v210_v9 }
  0x1b   :  { %144 = vmatprep.subr.bf16.mxu0 %v242_v1 }
  0x1e   :  { %145 = vmatpush1.bf16.msra.mxu0 %v211_v10 }
  0x1f   :  { %146 = vmatprep.subr.bf16.mxu0 %v242_v1 }
  0x22   :  { %147 = vmatpush1.bf16.msra.mxu0 %v212_v11 }
  0x23   :  { %148 = vmatprep.subr.bf16.mxu0 %v242_v1 }
  0x26   :  { %149 = vmatpush1.bf16.msra.mxu0 %v213_v12 }
  0x27   :  { %150 = vmatprep.subr.bf16.mxu0 %v242_v1 }
  0x2a   :  { %151 = vmatpush1.bf16.msra.mxu0 %v214_v13 }
  0x2b   :  { %152 = vmatprep.subr.bf16.mxu0 %v242_v1 }
  0x2e   :  { %153 = vmatpush1.bf16.msra.mxu0 %v215_v14 }
  0x31   :  { %163 = vmatmul.mubr.bf16.vlgmr.msra.gmra.mrb[0].mxu0 %v187_v15 }
 0x104   :  { %v164_v17 = vpop.f32.mrb[0].mxu0 }
 0x105   :  { %v165_v18 = vadd.f32 %v186_v16, %v164_v17  ;;  %v166_v19 = vpop.f32.mrb[1].mxu0 }
 0x106   :  { %v167_v20 = vpop.f32.mrb[2].mxu0 }
 0x107   :  { %v168_v21 = vpop.f32.mrb[3].mxu0  ;;  %171 = vst.msk [vmem:[#allocation2] sm:$0xff] %vm170_vm1, %v165_v18 }
 0x108   :  { %229 = shalt.err (!%p226_p4)
}
 0x109   :  { %s230_s2 = scalar_lea.hbm %s321_s3, 128 }
 0x10a   :  { %p231_p5 = scmp.ne.s32.totalorder %s321_s3, %s230_s2  ;;  %p234_p6 = scmp.lt.u32.totalorder %s230_s2, %s321_s3 }
 0x10c   :  { %p236_p7 = pnand %p234_p6, %p231_p5 }
 0x10e   :  { %239 = shalt.err (!%p236_p7)
}
 0x10f   :  { %181 = dma.vmem_to_hbm [thread:$0]  %s179_s13, 128, %s321_s3, [#allocation3]  }
 0x110   :  { %240 = dma.done.wait [#allocation3], 128  }
 0x111   :  { %241 = vsyncadd [#allocation3], 4294967168 }
 0x112   :  { %185 = vsyncpa [#allocation3], 1 }

</bundles_post_ra>
